<compile_context>
chip_gen: v6e
topology: v6e:2x2x1
jax: 0.10.0
libtpu: 0.0.40
codegen_flags: <defaults>
</compile_context>

<pallas_src>
import math
import functools

import numpy as np
import jax
import jax.numpy as jnp
from jax.experimental import pallas as pl
from jax.experimental.pallas import tpu as pltpu


def build_pe_table(d_model: int, max_seq_len: int = 80) -> np.ndarray:
    """Reproduce the exact (slightly unusual) formula from the PyTorch __init__."""
    pe = np.zeros((max_seq_len, d_model), dtype=np.float32)
    pos = np.arange(max_seq_len, dtype=np.float32)[:, None]          # (L, 1)
    i_even = np.arange(0, d_model, 2, dtype=np.float32)[None, :]     # (1, D/2)
    # pe[pos, i]     = sin(pos / 10000 ** (2*i/d_model))
    pe[:, 0::2] = np.sin(pos / (10000.0 ** (2.0 * i_even / d_model)))
    # pe[pos, i + 1] = cos(pos / 10000 ** (2*(i+1)/d_model))   <- intentional,
    # matches the reference module; do NOT "fix" to the standard Vaswani form.
    pe[:, 1::2] = np.cos(pos / (10000.0 ** (2.0 * (i_even + 1.0) / d_model)))
    return pe


# --------------------------------------------------------------------------- #
# Kernel
# --------------------------------------------------------------------------- #
def _pos_enc_kernel(x_ref, pe_ref, o_ref, *, scale, reps):
    # x_ref / o_ref: (row_tile, col_tile) tile of the folded (B*P, S*D/P) view.
    # pe_ref:        (P, col_tile) fp32 block; rows repeat every P x-rows.
    pe = pe_ref[...]
    if reps > 1 and pe.shape[0] > 1:
        pe = jnp.tile(pe, (reps, 1))          # sublane replicate -> (row_tile, col_tile)
    x = x_ref[...].astype(jnp.float32)        # fp32 accumulate (parity with fp32 pe buffer)
    o_ref[...] = (x * scale + pe).astype(o_ref.dtype)


# --------------------------------------------------------------------------- #
# Tiling helpers (host-side, purely static)
# --------------------------------------------------------------------------- #
def _divisors(n: int):
    ds = set()
    i = 1
    while i * i <= n:
        if n % i == 0:
            ds.add(i)
            ds.add(n // i)
        i += 1
    return ds


def _pick_tile(extent: int, hw_unit: int, byte_cap: int, bytes_per_unit: int,
               multiple_of: int = 1) -> int:
    """Largest divisor t of `extent` with t % multiple_of == 0,
    (t % hw_unit == 0 or t == extent), and t * bytes_per_unit <= byte_cap.
    Falls back to the smallest legal divisor when nothing fits the byte cap
    (budget is soft; the VMEM limit still has ample slack)."""
    legal = sorted(d for d in _divisors(extent)
                   if d % multiple_of == 0 and (d % hw_unit == 0 or d == extent))
    fitting = [d for d in legal if d * bytes_per_unit <= byte_cap]
    return fitting[-1] if fitting else legal[0]


def _choose_fold(batch: int, flat_cols: int, sublane: int) -> int:
    """Fold factor P: (batch, flat_cols) -> (batch*P, flat_cols//P) so rows fill
    the sublanes while the lane dim stays a multiple of 128."""
    if batch >= sublane or flat_cols % 128 != 0:
        return 1
    fold = 1
    for p in sorted(d for d in _divisors(flat_cols) if (flat_cols // d) % 128 == 0):
        fold = p
        if batch * p >= sublane:
            break
    return fold


# --------------------------------------------------------------------------- #
# Wrapper
# --------------------------------------------------------------------------- #
def positional_encoder(x: jax.Array, pe_table: jax.Array, *,
                       donate_x: bool = True,
                       tile_bytes: int = 4 << 20) -> jax.Array:
    """x: (B, S, D); pe_table: (max_seq_len, D).  Returns x*sqrt(D) + pe[:S]."""
    B, S, D = x.shape
    SD = S * D
    scale = math.sqrt(D)
    itemsize = np.dtype(x.dtype).itemsize
    sublane = 8 * max(1, 4 // itemsize)            # 8 (f32), 16 (bf16), 32 (i8)

    # ---- sublane fold: (B, S*D) -> (B*P, S*D/P) ------------------------------
    P = _choose_fold(B, SD, sublane)
    R, C = B * P, SD // P

    x_view = x.reshape(R, C)                                       # free metadata reshape
    pe_view = pe_table[:S, :].astype(jnp.float32).reshape(P, C)    # fp32 for parity

    # ---- byte-budget tile selection ------------------------------------------
    if P * C * itemsize <= tile_bytes:
        # A full folded-row slab fits the budget -> fully contiguous block DMAs,
        # 1-length column grid (pe becomes VMEM-resident for the whole grid).
        col_tile = C
        row_tile = _pick_tile(R, sublane, tile_bytes, C * itemsize, multiple_of=P)
    else:
        row_tile = _pick_tile(R, sublane, 0, 1, multiple_of=P)     # smallest legal
        col_tile = _pick_tile(C, 128, tile_bytes, row_tile * itemsize)

    # Keep both v7x TensorCores busy: avoid a 1-step grid on non-trivial inputs.
    if R == row_tile and C == col_tile and R * C * itemsize >= (2 << 20):
        smaller = _pick_tile(R, sublane, (row_tile // 2) * C * itemsize,
                             C * itemsize, multiple_of=P)
        if smaller < row_tile:
            row_tile = smaller

    grid = (R // row_tile, C // col_tile)
    reps = row_tile // P

    # Double-buffered x-in + out tiles, resident fp32 pe block, plus slack.
    vmem_needed = 4 * row_tile * col_tile * itemsize + 2 * P * col_tile * 4 + (4 << 20)
    vmem_limit = min(48 << 20, max(32 << 20, vmem_needed))   # <= v7x 64 MiB physical

    kernel = functools.partial(_pos_enc_kernel, scale=scale, reps=reps)

    out_view = pl.pallas_call(
        kernel,
        out_shape=jax.ShapeDtypeStruct((R, C), x.dtype),
        grid_spec=pltpu.PrefetchScalarGridSpec(
            num_scalar_prefetch=0,
            grid=grid,
            in_specs=[
                pl.BlockSpec((row_tile, col_tile), lambda i, j: (i, j)),
                pl.BlockSpec((P, col_tile), lambda i, j: (0, j)),
            ],
            out_specs=pl.BlockSpec((row_tile, col_tile), lambda i, j: (i, j)),
        ),
        compiler_params=pltpu.CompilerParams(
            # Purely elementwise => both grid axes independent; lets the grid
            # shard across the two TensorCores on v7x.
            dimension_semantics=("parallel", "parallel"),
            vmem_limit_bytes=vmem_limit,
        ),
        cost_estimate=pl.CostEstimate(
            flops=2 * B * SD,                                # one mul + one add / elem
            transcendentals=0,
            bytes_accessed=2 * B * SD * itemsize + SD * 4,   # x read + out write + pe
        ),
        # In-place when the caller donates x (harmless otherwise: XLA copies).
        input_output_aliases=({0: 0} if donate_x else {}),
    )(x_view, pe_view)

    return out_view.reshape(B, S, D)


if __name__ == "__main__":
    # Small shapes consistent with the module: batch=2, seq=8, d_model=32.
    B, S, D = 2, 8, 32
    MAX_SEQ_LEN = 80

    key = jax.random.PRNGKey(0)
    x = jax.random.normal(key, (B, S, D), dtype=jnp.float32)
    pe_table = jnp.asarray(build_pe_table(D, MAX_SEQ_LEN))

    # Host copies for the reference (x is donated to the kernel below).
    x_np = np.asarray(x)
    pe_np = np.asarray(pe_table)

    fwd = jax.jit(positional_encoder, donate_argnums=(0,))
    out = jax.block_until_ready(fwd(x, pe_table))

    ref = x_np * math.sqrt(D) + pe_np[:S, :][None, :, :]
    np.testing.assert_allclose(np.asarray(out), ref, rtol=1e-6, atol=1e-6)

    print("KERNEL_OK")
</pallas_src>

<mosaic_0001>
module attributes {stable_mosaic.version = 11 : i64} {
  func.func @_pos_enc_kernel(%arg0: i32, %arg1: i32, %arg2: memref<4x128xf32, #tpu.memory_space<vmem>>, %arg3: memref<2x128xf32, #tpu.memory_space<vmem>>, %arg4: memref<4x128xf32, #tpu.memory_space<vmem>>) attributes {dimension_semantics = [#tpu.dimension_semantics<parallel>, #tpu.dimension_semantics<parallel>], iteration_bounds = array<i64: 1, 1>, scalar_prefetch = 0 : i64, scratch_operands = 0 : i64, tpu.core_type = #tpu.core_type<tc>, window_params = [{transform_indices = @transform_0, window_bounds = array<i64: 4, 128>}, {transform_indices = @transform_1, window_bounds = array<i64: 2, 128>}, {transform_indices = @transform_2, window_bounds = array<i64: 4, 128>}]} {
    %c0 = arith.constant 0 : index
    %c0_0 = arith.constant 0 : index
    %0 = vector.load %arg3[%c0, %c0_0] : memref<2x128xf32, #tpu.memory_space<vmem>>, vector<2x128xf32>
    %1 = tpu.concatenate %0, %0 in 0 : vector<2x128xf32>, vector<2x128xf32> -> vector<4x128xf32>
    %c0_1 = arith.constant 0 : index
    %c0_2 = arith.constant 0 : index
    %2 = vector.load %arg2[%c0_1, %c0_2] : memref<4x128xf32, #tpu.memory_space<vmem>>, vector<4x128xf32>
    %cst = arith.constant 5.65685415 : f32
    %3 = vector.broadcast %cst : f32 to vector<4x128xf32>
    %4 = arith.mulf %2, %3 : vector<4x128xf32>
    %5 = arith.addf %4, %1 : vector<4x128xf32>
    %c0_3 = arith.constant 0 : index
    %c0_4 = arith.constant 0 : index
    %6 = vector.load %arg4[%c0_3, %c0_4] : memref<4x128xf32, #tpu.memory_space<vmem>>, vector<4x128xf32>
    tpu.vector_store %arg4[%c0_3, %c0_4], %5 {strides = array<i32>} : memref<4x128xf32, #tpu.memory_space<vmem>>, vector<4x128xf32>,
    return
  }
  func.func @transform_0(%arg0: i32, %arg1: i32) -> (i32, i32) {
    %c0_i32 = arith.constant 0 : i32
    return %arg0, %arg1 : i32, i32
  }
  func.func @transform_1(%arg0: i32, %arg1: i32) -> (i32, i32) {
    %c0_i32 = arith.constant 0 : i32
    %c0_i32_0 = arith.constant 0 : i32
    return %c0_i32, %arg1 : i32, i32
  }
  func.func @transform_2(%arg0: i32, %arg1: i32) -> (i32, i32) {
    %c0_i32 = arith.constant 0 : i32
    return %arg0, %arg1 : i32, i32
  }
}

</mosaic_0001>

<bundles_post_ra>
// kernel: positional_encoder.1
= control target key start
LH: loop header
LB: loop body
LE: loop exit
PB: predicated region body
PF: predicated region fallthrough
CT: control target
= control target key end

     0   :  { %vm15_vm0 = vcmask 1041408   ;;  %s49_s0 = inlined_call_operand.vmem [shape: f32[4,128], index: 0, kind: input, shape index: {}, may-alias: {0,2}]   ;;  %s50_s1 = inlined_call_operand.vmem [shape: f32[2,128], index: 1, kind: input, shape index: {}]   ;;  %s51_s2 = inlined_call_operand.vmem [shape: f32[4,128], index: 2, kind: output, shape index: {}, may-alias: {0,2}]  }
   0x1   :  { %v11_v0 = vld [vmem:[%s50_s1] sm:$0x3] }
   0x2   :  { %v17_v1 = vld [vmem:[%s49_s0] sm:$0xf]  ;;  %v13_v2 = vrot.slane %v11_v0, 6 }
   0x3   :  { %v18_v3 = vmul.f32 5.656854, %v17_v1 }
   0x4   :  { %v16_v4 = vsel %vm15_vm0, %v11_v0, %v13_v2 }
   0x5   :  { %v19_v5 = vadd.f32 %v18_v3, %v16_v4 }
   0x7   :  { %20 = vst [vmem:[%s51_s2] sm:$0xf] %v19_v5 }

</bundles_post_ra>
